<compile_context>
chip_gen: v5e
topology: v5e:2x2
jax: 0.10.0
libtpu: 0.0.40
codegen_flags: <defaults>
</compile_context>

<pallas_src>
import jax
import jax.numpy as jnp
from jax.experimental import pallas as pl
from jax.experimental.pallas import tpu as pltpu

# ---- hyper-parameters mirroring SimpleCNN.__init__ ------------------------
SEN_NUM = 100                      # Conv2d in/out channels (self.sen_num)
KSIZE = 3                          # self.kernel_size
MAX_SEN = 5                        # AppConf.max_sen (small, see constraint below)
EMB_DIM = 20                       # embedding_dim, chosen so flatten size == 600
VOCAB = 50
CLASS_SIZE = 4
BATCH = 2

H_OUT = EMB_DIM - KSIZE + 1        # 18  conv output height
W_OUT = MAX_SEN - KSIZE + 1        # 3   conv output width
POOL = MAX_SEN - KSIZE + 1         # 3   MaxPool2d kernel (== stride)
HP = H_OUT // POOL                 # 6   pooled height
WP = W_OUT // POOL                 # 1   pooled width
FLAT = SEN_NUM * HP * WP           # 600 -> matches nn.Linear(600, class_size)
K_DIM = SEN_NUM * KSIZE * KSIZE    # 900 im2col reduction dim
ROWS = H_OUT * W_OUT               # 54  conv output positions per image
PW = POOL * W_OUT                  # 9   im2col rows per 3x3 pool window

# lane-dense padded sizes (zero padding; padded channels/rows cannot leak, see below)
K_PAD = 1024                       # 900 -> 8 full (8,128) vregs along MXU K dim
C_PAD = 128                        # conv Cout 100 -> 128 lanes
CLS_PAD = 128                      # fc output 4 -> 128 lanes (unmasked store)

assert FLAT == 600, "shape choice must reproduce nn.Linear(600, class_size)"


# ---------------------------- Pallas kernel --------------------------------

def fused_cnn_kernel(cols_ref, wconv_ref, bconv_ref, wfc_ref, bfc_ref, o_ref):
    """One grid step = one batch element; conv+bias+ReLU+maxpool+fc+sigmoid fused.

    cols_ref : (1, ROWS, K_PAD)       bf16 im2col patches of one image
    wconv_ref: (K_PAD, C_PAD)         bf16 conv weight, zero-padded
    bconv_ref: (1, C_PAD)             f32 conv bias, zero-padded
    wfc_ref  : (HP, C_PAD, CLS_PAD)   f32 fc weight pre-permuted to (hp, c, class)
    bfc_ref  : (1, CLS_PAD)           f32 fc bias, zero-padded
    o_ref    : (1, 1, CLS_PAD)        f32 sigmoid(fc) output
    """
    patches = cols_ref[0]                                        # (54, 1024) bf16
    acc = jnp.dot(patches, wconv_ref[...],
                  preferred_element_type=jnp.float32)            # (54, 128) on MXU
    acc = jnp.maximum(acc + bconv_ref[...], 0.0)                 # bias + ReLU
    # Padded channels (100:128) are exactly 0 here (zero weights + zero bias + ReLU),
    # and the matching wfc rows are zero, so padding cannot leak into the FC.

    z = bfc_ref[...]                                             # (1, 128) fc accumulator
    for hp in range(HP):                                         # static unroll (6)
        # 3x3 max-pool window hp == 9 consecutive im2col rows (W_OUT == POOL)
        pooled = jnp.max(acc[hp * PW:(hp + 1) * PW], axis=0,
                         keepdims=True)                          # (1, 128)
        z = z + jnp.dot(pooled, wfc_ref[hp],
                        preferred_element_type=jnp.float32)      # (1, 128)
    o_ref[0] = jax.nn.sigmoid(z)                                 # lane-dense store


# ------------------------------ wrapper -------------------------------------

def simple_cnn_forward(x_idx, emb_table, w_conv, b_conv, w_fc, b_fc):
    """x_idx: (B, SEN_NUM, MAX_SEN) int32 token ids.  Returns (B, CLASS_SIZE)."""
    B = x_idx.shape[0]

    # TODO(synk): nn.Dropout(0.5) is identity at inference (eval mode); training-mode dropout not implemented.
    emb = emb_table[x_idx]                                # (B, 100, MAX_SEN, EMB_DIM)
    inp = jnp.transpose(emb, (0, 1, 3, 2))                # (B, 100, EMB_DIM, MAX_SEN) NCHW

    # im2col glue: rows ordered (ho, wo); reduction index = ci*9 + kh*3 + kw
    cols = jnp.stack(
        [inp[:, :, kh:kh + H_OUT, kw:kw + W_OUT]
         for kh in range(KSIZE) for kw in range(KSIZE)], axis=2)   # (B, C, 9, Ho, Wo)
    cols = cols.transpose(0, 3, 4, 1, 2).reshape(B, ROWS, K_DIM)   # (B, 54, 900)
    cols = jnp.pad(cols, ((0, 0), (0, 0), (0, K_PAD - K_DIM)))     # K 900 -> 1024
    cols = cols.astype(jnp.bfloat16)

    # PyTorch Conv2d weight (Cout, Cin, kh, kw) -> (Cin*kh*kw, Cout), zero-padded
    w_mat = w_conv.transpose(1, 2, 3, 0).reshape(K_DIM, SEN_NUM)
    w_mat = jnp.pad(w_mat, ((0, K_PAD - K_DIM), (0, C_PAD - SEN_NUM)))
    w_mat = w_mat.astype(jnp.bfloat16)
    b_cv = jnp.pad(b_conv.reshape(1, SEN_NUM), ((0, 0), (0, C_PAD - SEN_NUM)))

    # FC weight: PyTorch flatten index is c*HP + hp; kernel consumes (hp, c, class).
    # One-time permutation + zero padding (padded c rows / class cols are zero).
    wfc3 = jnp.zeros((HP, C_PAD, CLS_PAD), jnp.float32)
    wfc3 = wfc3.at[:, :SEN_NUM, :CLASS_SIZE].set(
        jnp.transpose(w_fc.reshape(SEN_NUM, HP, CLASS_SIZE), (1, 0, 2)))
    b_f = jnp.pad(b_fc.reshape(1, CLASS_SIZE), ((0, 0), (0, CLS_PAD - CLASS_SIZE)))

    out = pl.pallas_call(
        fused_cnn_kernel,
        out_shape=jax.ShapeDtypeStruct((B, 1, CLS_PAD), jnp.float32),
        grid_spec=pltpu.PrefetchScalarGridSpec(
            num_scalar_prefetch=0,
            grid=(B,),
            in_specs=[
                pl.BlockSpec((1, ROWS, K_PAD), lambda i: (i, 0, 0)),
                pl.BlockSpec((K_PAD, C_PAD), lambda i: (0, 0)),
                pl.BlockSpec((1, C_PAD), lambda i: (0, 0)),
                pl.BlockSpec((HP, C_PAD, CLS_PAD), lambda i: (0, 0, 0)),
                pl.BlockSpec((1, CLS_PAD), lambda i: (0, 0)),
            ],
            out_specs=pl.BlockSpec((1, 1, CLS_PAD), lambda i: (i, 0, 0)),
        ),
        compiler_params=pltpu.CompilerParams(
            dimension_semantics=("parallel",)),
    )(cols, w_mat, b_cv, wfc3, b_f)                       # (B, 1, 128)

    return out[:, 0, :CLASS_SIZE]                         # slice off padded lanes


# -------------------------- pure-JAX reference ------------------------------

def ref_forward(x_idx, emb_table, w_conv, b_conv, w_fc, b_fc):
    B = x_idx.shape[0]
    emb = emb_table[x_idx]
    inp = jnp.transpose(emb, (0, 1, 3, 2))
    conv = jax.lax.conv_general_dilated(
        inp, w_conv, (1, 1), "VALID",
        dimension_numbers=("NCHW", "OIHW", "NCHW"))
    conv = jnp.maximum(conv + b_conv.reshape(1, -1, 1, 1), 0.0)
    pooled = jax.lax.reduce_window(conv, -jnp.inf, jax.lax.max,
                                   (1, 1, POOL, POOL), (1, 1, POOL, POOL), "VALID")
    return jax.nn.sigmoid(pooled.reshape(B, -1) @ w_fc + b_fc)


# --------------------------------- main --------------------------------------

if __name__ == "__main__":
    key = jax.random.PRNGKey(0)
    k1, k2, k3, k4, k5, k6 = jax.random.split(key, 6)

    # x: token ids (B, sen_num, max_sen); l: lengths (unused by forward)
    x_idx = jax.random.randint(k1, (BATCH, SEN_NUM, MAX_SEN), 0, VOCAB,
                               dtype=jnp.int32)
    lengths = jnp.full((BATCH,), MAX_SEN, dtype=jnp.int32)  # unused, kept for parity

    # deterministic synthetic parameters (shapes from SimpleCNN.__init__)
    emb_table = jax.random.normal(k2, (VOCAB, EMB_DIM), jnp.float32) * 0.1
    w_conv = jax.random.normal(k3, (SEN_NUM, SEN_NUM, KSIZE, KSIZE), jnp.float32) * 0.05
    b_conv = jax.random.normal(k4, (SEN_NUM,), jnp.float32) * 0.05
    w_fc = jax.random.normal(k5, (FLAT, CLASS_SIZE), jnp.float32) * 0.05
    b_fc = jax.random.normal(k6, (1, CLASS_SIZE), jnp.float32) * 0.05

    out = jax.jit(simple_cnn_forward)(x_idx, emb_table, w_conv, b_conv, w_fc, b_fc)
    out = jax.block_until_ready(out)

    ref = ref_forward(x_idx, emb_table, w_conv, b_conv, w_fc, b_fc)
    assert out.shape == (BATCH, CLASS_SIZE), out.shape
    assert jnp.allclose(out, ref, atol=1e-2, rtol=1e-2), (out, ref)

    print("KERNEL_OK")
</pallas_src>

<mosaic_0001>
module attributes {stable_mosaic.version = 11 : i64} {
  func.func @fused_cnn_kernel(%arg0: i32, %arg1: memref<1x54x1024xbf16, #tpu.memory_space<vmem>>, %arg2: memref<1024x128xbf16, #tpu.memory_space<vmem>>, %arg3: memref<1x128xf32, #tpu.memory_space<vmem>>, %arg4: memref<6x128x128xf32, #tpu.memory_space<vmem>>, %arg5: memref<1x128xf32, #tpu.memory_space<vmem>>, %arg6: memref<1x1x128xf32, #tpu.memory_space<vmem>>) attributes {dimension_semantics = [#tpu.dimension_semantics<parallel>], iteration_bounds = array<i64: 2>, scalar_prefetch = 0 : i64, scratch_operands = 0 : i64, tpu.core_type = #tpu.core_type<tc>, window_params = [{transform_indices = @transform_0, window_bounds = array<i64: 1, 54, 1024>}, {pipeline_mode = #tpu.pipeline_mode<synchronous>, transform_indices = @transform_1, window_bounds = array<i64: 1024, 128>}, {pipeline_mode = #tpu.pipeline_mode<synchronous>, transform_indices = @transform_2, window_bounds = array<i64: 1, 128>}, {pipeline_mode = #tpu.pipeline_mode<synchronous>, transform_indices = @transform_3, window_bounds = array<i64: 6, 128, 128>}, {pipeline_mode = #tpu.pipeline_mode<synchronous>, transform_indices = @transform_4, window_bounds = array<i64: 1, 128>}, {transform_indices = @transform_5, window_bounds = array<i64: 1, 1, 128>}]} {
    %c0 = arith.constant 0 : index
    %c0_0 = arith.constant 0 : index
    %c0_1 = arith.constant 0 : index
    %0 = vector.load %arg1[%c0, %c0_0, %c0_1] : memref<1x54x1024xbf16, #tpu.memory_space<vmem>>, vector<1x54x1024xbf16>
    %1 = vector.shape_cast %0 : vector<1x54x1024xbf16> to vector<54x1024xbf16>
    %c0_2 = arith.constant 0 : index
    %c0_3 = arith.constant 0 : index
    %2 = vector.load %arg2[%c0_2, %c0_3] : memref<1024x128xbf16, #tpu.memory_space<vmem>>, vector<1024x128xbf16>
    %cst = arith.constant dense<0.000000e+00> : vector<54x128xf32>
    %3 = tpu.matmul %1, %2, %cst {dimension_numbers = #tpu.dot_dimension_numbers<[1], [0], [0], [1], [0, 0, 1, 1], [], []>} : vector<54x1024xbf16>, vector<1024x128xbf16>, vector<54x128xf32> -> vector<54x128xf32>
    %c0_4 = arith.constant 0 : index
    %c0_5 = arith.constant 0 : index
    %4 = vector.load %arg3[%c0_4, %c0_5] : memref<1x128xf32, #tpu.memory_space<vmem>>, vector<1x128xf32>
    %5 = vector.broadcast %4 : vector<1x128xf32> to vector<54x128xf32>
    %6 = arith.addf %3, %5 : vector<54x128xf32>
    %cst_6 = arith.constant 0.000000e+00 : f32
    %7 = vector.broadcast %cst_6 : f32 to vector<54x128xf32>
    %8 = arith.maximumf %6, %7 : vector<54x128xf32>
    %c0_7 = arith.constant 0 : index
    %c0_8 = arith.constant 0 : index
    %9 = vector.load %arg5[%c0_7, %c0_8] : memref<1x128xf32, #tpu.memory_space<vmem>>, vector<1x128xf32>
    %10 = vector.extract_strided_slice %8 {offsets = [0, 0], sizes = [9, 128], strides = [1, 1]} : vector<54x128xf32> to vector<9x128xf32>
    %cst_9 = arith.constant dense<0xFF800000> : vector<128xf32>
    %11 = vector.multi_reduction <maximumf>, %10, %cst_9 [0] : vector<9x128xf32> to vector<128xf32>
    %12 = vector.shape_cast %11 : vector<128xf32> to vector<1x128xf32>
    %c0_10 = arith.constant 0 : index
    %c0_11 = arith.constant 0 : index
    %c0_12 = arith.constant 0 : index
    %13 = vector.load %arg4[%c0_10, %c0_11, %c0_12] : memref<6x128x128xf32, #tpu.memory_space<vmem>>, vector<1x128x128xf32>
    %14 = vector.shape_cast %13 : vector<1x128x128xf32> to vector<128x128xf32>
    %cst_13 = arith.constant dense<0.000000e+00> : vector<1x128xf32>
    %15 = tpu.matmul %12, %14, %cst_13 {dimension_numbers = #tpu.dot_dimension_numbers<[1], [0], [0], [1], [0, 0, 1, 1], [], []>} : vector<1x128xf32>, vector<128x128xf32>, vector<1x128xf32> -> vector<1x128xf32>
    %16 = arith.addf %9, %15 : vector<1x128xf32>
    %17 = vector.extract_strided_slice %8 {offsets = [9, 0], sizes = [9, 128], strides = [1, 1]} : vector<54x128xf32> to vector<9x128xf32>
    %cst_14 = arith.constant dense<0xFF800000> : vector<128xf32>
    %18 = vector.multi_reduction <maximumf>, %17, %cst_14 [0] : vector<9x128xf32> to vector<128xf32>
    %19 = vector.shape_cast %18 : vector<128xf32> to vector<1x128xf32>
    %c1 = arith.constant 1 : index
    %c0_15 = arith.constant 0 : index
    %c0_16 = arith.constant 0 : index
    %20 = vector.load %arg4[%c1, %c0_15, %c0_16] : memref<6x128x128xf32, #tpu.memory_space<vmem>>, vector<1x128x128xf32>
    %21 = vector.shape_cast %20 : vector<1x128x128xf32> to vector<128x128xf32>
    %cst_17 = arith.constant dense<0.000000e+00> : vector<1x128xf32>
    %22 = tpu.matmul %19, %21, %cst_17 {dimension_numbers = #tpu.dot_dimension_numbers<[1], [0], [0], [1], [0, 0, 1, 1], [], []>} : vector<1x128xf32>, vector<128x128xf32>, vector<1x128xf32> -> vector<1x128xf32>
    %23 = arith.addf %16, %22 : vector<1x128xf32>
    %24 = vector.extract_strided_slice %8 {offsets = [18, 0], sizes = [9, 128], strides = [1, 1]} : vector<54x128xf32> to vector<9x128xf32>
    %cst_18 = arith.constant dense<0xFF800000> : vector<128xf32>
    %25 = vector.multi_reduction <maximumf>, %24, %cst_18 [0] : vector<9x128xf32> to vector<128xf32>
    %26 = vector.shape_cast %25 : vector<128xf32> to vector<1x128xf32>
    %c2 = arith.constant 2 : index
    %c0_19 = arith.constant 0 : index
    %c0_20 = arith.constant 0 : index
    %27 = vector.load %arg4[%c2, %c0_19, %c0_20] : memref<6x128x128xf32, #tpu.memory_space<vmem>>, vector<1x128x128xf32>
    %28 = vector.shape_cast %27 : vector<1x128x128xf32> to vector<128x128xf32>
    %cst_21 = arith.constant dense<0.000000e+00> : vector<1x128xf32>
    %29 = tpu.matmul %26, %28, %cst_21 {dimension_numbers = #tpu.dot_dimension_numbers<[1], [0], [0], [1], [0, 0, 1, 1], [], []>} : vector<1x128xf32>, vector<128x128xf32>, vector<1x128xf32> -> vector<1x128xf32>
    %30 = arith.addf %23, %29 : vector<1x128xf32>
    %31 = vector.extract_strided_slice %8 {offsets = [27, 0], sizes = [9, 128], strides = [1, 1]} : vector<54x128xf32> to vector<9x128xf32>
    %cst_22 = arith.constant dense<0xFF800000> : vector<128xf32>
    %32 = vector.multi_reduction <maximumf>, %31, %cst_22 [0] : vector<9x128xf32> to vector<128xf32>
    %33 = vector.shape_cast %32 : vector<128xf32> to vector<1x128xf32>
    %c3 = arith.constant 3 : index
    %c0_23 = arith.constant 0 : index
    %c0_24 = arith.constant 0 : index
    %34 = vector.load %arg4[%c3, %c0_23, %c0_24] : memref<6x128x128xf32, #tpu.memory_space<vmem>>, vector<1x128x128xf32>
    %35 = vector.shape_cast %34 : vector<1x128x128xf32> to vector<128x128xf32>
    %cst_25 = arith.constant dense<0.000000e+00> : vector<1x128xf32>
    %36 = tpu.matmul %33, %35, %cst_25 {dimension_numbers = #tpu.dot_dimension_numbers<[1], [0], [0], [1], [0, 0, 1, 1], [], []>} : vector<1x128xf32>, vector<128x128xf32>, vector<1x128xf32> -> vector<1x128xf32>
    %37 = arith.addf %30, %36 : vector<1x128xf32>
    %38 = vector.extract_strided_slice %8 {offsets = [36, 0], sizes = [9, 128], strides = [1, 1]} : vector<54x128xf32> to vector<9x128xf32>
    %cst_26 = arith.constant dense<0xFF800000> : vector<128xf32>
    %39 = vector.multi_reduction <maximumf>, %38, %cst_26 [0] : vector<9x128xf32> to vector<128xf32>
    %40 = vector.shape_cast %39 : vector<128xf32> to vector<1x128xf32>
    %c4 = arith.constant 4 : index
    %c0_27 = arith.constant 0 : index
    %c0_28 = arith.constant 0 : index
    %41 = vector.load %arg4[%c4, %c0_27, %c0_28] : memref<6x128x128xf32, #tpu.memory_space<vmem>>, vector<1x128x128xf32>
    %42 = vector.shape_cast %41 : vector<1x128x128xf32> to vector<128x128xf32>
    %cst_29 = arith.constant dense<0.000000e+00> : vector<1x128xf32>
    %43 = tpu.matmul %40, %42, %cst_29 {dimension_numbers = #tpu.dot_dimension_numbers<[1], [0], [0], [1], [0, 0, 1, 1], [], []>} : vector<1x128xf32>, vector<128x128xf32>, vector<1x128xf32> -> vector<1x128xf32>
    %44 = arith.addf %37, %43 : vector<1x128xf32>
    %45 = vector.extract_strided_slice %8 {offsets = [45, 0], sizes = [9, 128], strides = [1, 1]} : vector<54x128xf32> to vector<9x128xf32>
    %cst_30 = arith.constant dense<0xFF800000> : vector<128xf32>
    %46 = vector.multi_reduction <maximumf>, %45, %cst_30 [0] : vector<9x128xf32> to vector<128xf32>
    %47 = vector.shape_cast %46 : vector<128xf32> to vector<1x128xf32>
    %c5 = arith.constant 5 : index
    %c0_31 = arith.constant 0 : index
    %c0_32 = arith.constant 0 : index
    %48 = vector.load %arg4[%c5, %c0_31, %c0_32] : memref<6x128x128xf32, #tpu.memory_space<vmem>>, vector<1x128x128xf32>
    %49 = vector.shape_cast %48 : vector<1x128x128xf32> to vector<128x128xf32>
    %cst_33 = arith.constant dense<0.000000e+00> : vector<1x128xf32>
    %50 = tpu.matmul %47, %49, %cst_33 {dimension_numbers = #tpu.dot_dimension_numbers<[1], [0], [0], [1], [0, 0, 1, 1], [], []>} : vector<1x128xf32>, vector<128x128xf32>, vector<1x128xf32> -> vector<1x128xf32>
    %51 = arith.addf %44, %50 : vector<1x128xf32>
    %52 = arith.negf %51 : vector<1x128xf32>
    %53 = math.exp %52 : vector<1x128xf32>
    %cst_34 = arith.constant 1.000000e+00 : f32
    %54 = vector.broadcast %cst_34 : f32 to vector<1x128xf32>
    %55 = arith.addf %54, %53 : vector<1x128xf32>
    %56 = arith.divf %54, %55 : vector<1x128xf32>
    %c0_35 = arith.constant 0 : index
    %c0_36 = arith.constant 0 : index
    %c0_37 = arith.constant 0 : index
    %57 = vector.load %arg6[%c0_35, %c0_36, %c0_37] : memref<1x1x128xf32, #tpu.memory_space<vmem>>, vector<1x1x128xf32>
    %58 = vector.shape_cast %57 : vector<1x1x128xf32> to vector<1x128xf32>
    %59 = vector.shape_cast %56 : vector<1x128xf32> to vector<1x1x128xf32>
    tpu.vector_store %arg6[%c0_35, %c0_36, %c0_37], %59 {strides = array<i32>} : memref<1x1x128xf32, #tpu.memory_space<vmem>>, vector<1x1x128xf32>,
    return
  }
  func.func @transform_0(%arg0: i32) -> (i32, i32, i32) {
    %c0_i32 = arith.constant 0 : i32
    %c0_i32_0 = arith.constant 0 : i32
    %c0_i32_1 = arith.constant 0 : i32
    return %arg0, %c0_i32, %c0_i32_0 : i32, i32, i32
  }
  func.func @transform_1(%arg0: i32) -> (i32, i32) {
    %c0_i32 = arith.constant 0 : i32
    %c0_i32_0 = arith.constant 0 : i32
    %c0_i32_1 = arith.constant 0 : i32
    return %c0_i32, %c0_i32_0 : i32, i32
  }
  func.func @transform_2(%arg0: i32) -> (i32, i32) {
    %c0_i32 = arith.constant 0 : i32
    %c0_i32_0 = arith.constant 0 : i32
    %c0_i32_1 = arith.constant 0 : i32
    return %c0_i32, %c0_i32_0 : i32, i32
  }
  func.func @transform_3(%arg0: i32) -> (i32, i32, i32) {
    %c0_i32 = arith.constant 0 : i32
    %c0_i32_0 = arith.constant 0 : i32
    %c0_i32_1 = arith.constant 0 : i32
    %c0_i32_2 = arith.constant 0 : i32
    return %c0_i32, %c0_i32_0, %c0_i32_1 : i32, i32, i32
  }
  func.func @transform_4(%arg0: i32) -> (i32, i32) {
    %c0_i32 = arith.constant 0 : i32
    %c0_i32_0 = arith.constant 0 : i32
    %c0_i32_1 = arith.constant 0 : i32
    return %c0_i32, %c0_i32_0 : i32, i32
  }
  func.func @transform_5(%arg0: i32) -> (i32, i32, i32) {
    %c0_i32 = arith.constant 0 : i32
    %c0_i32_0 = arith.constant 0 : i32
    %c0_i32_1 = arith.constant 0 : i32
    return %arg0, %c0_i32, %c0_i32_0 : i32, i32, i32
  }
}

</mosaic_0001>

<bundles_post_ra>
// kernel: simple_cnn_forward.1
= control target key start
LH: loop header
LB: loop body
LE: loop exit
PB: predicated region body
PF: predicated region fallthrough
CT: control target
= control target key end

     0   :  { %10 = vsyncpa [#allocation3], 0  ;;  %s2905_s0 = inlined_call_operand.vmem [shape: bf16[2,54,1024], index: 0, kind: input, shape index: {}]   ;;  %s2906_s1 = inlined_call_operand.vmem [shape: bf16[1024,128], index: 1, kind: input, shape index: {}]   ;;  %s2907_s2 = inlined_call_operand.vmem [shape: f32[1,128], index: 2, kind: input, shape index: {}]   ;;  %s2908_s3 = inlined_call_operand.vmem [shape: f32[6,128,128], index: 3, kind: input, shape index: {}]   ;;  %s2909_s4 = inlined_call_operand.vmem [shape: f32[1,128], index: 4, kind: input, shape index: {}]   ;;  %s2910_s5 = inlined_call_operand.hbm [shape: f32[2,1,128], index: 5, kind: output, shape index: {}]  }
   0x1   :  { %12 = vsyncpa [#allocation3 + $0x1], 0  ;;  %s2192_s18 = smov 0   ;;  %s2194_s19 = smov 0  }
   0x2   :  { %s2196_s20 = smov 0   ;;  %s2198_s21 = smov 0  }
   0x3 LB: > { %s2213_s22 = sadd.s32 4294967295, %s2160_s21   ;;  %s1525_s23 = sadd.s32 4294967294, %s2160_s21   ;;  %s2160_s21 = sphi %s2198_s21, %s2916_s21   ;;  %s2156_s20 = sphi %s2196_s20, %s2915_s20   ;;  %s2152_s19 = sphi %s2194_s19, %s2914_s19   ;;  %s2148_s18 = sphi %s2192_s18, %s2913_s18  }
   0x4   : > { %s2217_s24 = sadd.s32 1, %s2160_s21   ;;  %s135_s25 = sadd.s32 1, %s2156_s20 }
   0x5   : > { %s132_s26 = ssub.s32 %s2160_s21, %s2217_s24  ;;  %p145_p0 = scmp.ne.s32.totalorder %s2156_s20, %s2152_s19 }
   0x6   : > { %p133_p1 = scmp.eq.s32.totalorder %s132_s26, 0  ;;  %p146_p2 = scmp.eq.s32.totalorder %s2213_s22, 1 }
   0x7   : > { %p151_p3 = scmp.ne.s32.totalorder %s2152_s19, %s2148_s18  ;;  %p152_p4 = scmp.eq.s32.totalorder %s1525_s23, 1 }
   0x8   : > { %s2228_s27 = scalar_select %p133_p1, %s2156_s20, %s135_s25  }
   0x9   : > { %p2230_p5 = por %p146_p2, %p145_p0  ;;  %p2234_p6 = por %p152_p4, %p151_p3 }
   0xa   : > { %p1528_p7 = scmp.ge.s32.totalorder %s2160_s21, 1  ;;  %p190_p8 = scmp.lt.s32.totalorder %s2160_s21, 3 }
   0xc   : > { %p191_p9 = pnand %p1528_p7, %p190_p8 }
   0xd   : > { %p217_p10 = scmp.lt.s32.totalorder (!%p191_p9), %s2213_s22, 1  ;;  %s215_s25 = sand.u32 (!%p191_p9), 1, %s2152_s19  }
   0xe   : > { %194 = sbr.rel (%p191_p9) target bundleno = 477 (0x1dd), region = 40  ;;  %s1466_s30 = scalar_lea.hbm (!%p191_p9), %s2910_s5, %s2213_s22 }
   0xf   : > { %s216_s6 = scalar_lea.vmem (!%p191_p9), [#allocation2], %s215_s25  ;;  %s1470_s8 = sshll.u32 (!%p191_p9), %s1466_s30, 4  ;;  %s1471_s8 = int_to_ptr.hbm [resolvable:$true] %s1470_s8 }
  0x10   : > { %s1468_s7 = sshll.u32 (!%p191_p9), %s216_s6, 4  ;;  %s1458_s10 = scalar_lea.sflag (!%p191_p9), [#allocation3], %s215_s25  ;;  %s1469_s7 = int_to_ptr.vmem [resolvable:$true] %s1468_s7 }
  0x11   : > { %s2118_s14 = scalar_lea.hbm (!%p191_p9), %s2910_s5, 2 }
  0x13   : > { %v1996_v0 = vld [vmem:[%s2906_s1 + $0x38] sm:$0xff]  ;;  %v1995_v4 = vld [vmem:[%s2906_s1 + $0x30] sm:$0xff]  ;;  %v1994_v8 = vld [vmem:[%s2906_s1 + $0x28] sm:$0xff]  ;;  %s218_s9 = scalar_select %p217_p10, %s2213_s22, 1  ;;  %vm1146_vm0 = vcmask 1040384   ;;  %vm1192_vm1 = vcmask 1047553  }
  0x14   : > { %v2004_v1 = vld [vmem:[%s2906_s1 + $0x78] sm:$0xff]  ;;  %914 = vmatpush.bf16.msra.mxu0 %v1996_v0  ;;  %v2003_v5 = vld [vmem:[%s2906_s1 + $0x70] sm:$0xff]  ;;  %v2002_v9 = vld [vmem:[%s2906_s1 + $0x68] sm:$0xff]  ;;  %vm1194_vm2 = vcmask 1041408   ;;  %vm1241_vm3 = vcmask 1047554   ;;  %vm1243_vm4 = vcmask 1042432  }
  0x15   : > { %v2012_v2 = vld [vmem:[%s2906_s1 + $0xb8] sm:$0xff]  ;;  %942 = vmatpush.bf16.msra.mxu1 %v2004_v1  ;;  %v2011_v6 = vld [vmem:[%s2906_s1 + $0xb0] sm:$0xff]  ;;  %v2010_v10 = vld [vmem:[%s2906_s1 + $0xa8] sm:$0xff]  ;;  %s2053_s23 = smul.u32 224, %s218_s9  ;;  %vm1290_vm5 = vcmask 1047555   ;;  %vm1292_vm6 = vcmask 1043456  }
  0x16   : > { %v2020_v3 = vld [vmem:[%s2906_s1 + $0xf8] sm:$0xff]  ;;  %970 = vmatpush.bf16.msra.mxu2 %v2012_v2  ;;  %v2019_v7 = vld [vmem:[%s2906_s1 + $0xf0] sm:$0xff]  ;;  %v2018_v11 = vld [vmem:[%s2906_s1 + $0xe8] sm:$0xff]  ;;  %vm1339_vm7 = vcmask 1047556   ;;  %vm1341_vm8 = vcmask 1044480   ;;  %vm1388_vm9 = vcmask 1047557  }
  0x17   : > { %998 = vmatpush.bf16.msra.mxu3 %v2020_v3  ;;  %v1993_v12 = vld [vmem:[%s2906_s1 + $0x20] sm:$0xff]  ;;  %v1992_v16 = vld [vmem:[%s2906_s1 + $0x18] sm:$0xff]  ;;  %v1991_v20 = vld [vmem:[%s2906_s1 + $0x10] sm:$0xff]  ;;  %s2323_s13 = scalar_lea.vmem %s2905_s0, %s2053_s23  ;;  %vm1390_vm10 = vcmask 1045504   ;;  %s2112_s22 = sshra.s32 %s1471_s8, 4  ;;  %s2113_s22 = int_to_ptr.hbm [resolvable:$true] %s2112_s22 }
  0x18   : > { %915 = vmatpush.bf16.msra.mxu0 %v1995_v4  ;;  %v2001_v13 = vld [vmem:[%s2906_s1 + $0x60] sm:$0xff]  ;;  %v2000_v17 = vld [vmem:[%s2906_s1 + $0x58] sm:$0xff]  ;;  %v1999_v21 = vld [vmem:[%s2906_s1 + $0x50] sm:$0xff]  ;;  %s2114_s11 = scalar_lea.hbm %s2113_s22, 1  ;;  %p2119_p0 = scmp.lt.s32.totalorder %s2113_s22, %s2910_s5 }
  0x19   : > { %943 = vmatpush.bf16.msra.mxu1 %v2003_v5  ;;  %v2009_v14 = vld [vmem:[%s2906_s1 + $0xa0] sm:$0xff]  ;;  %v2008_v18 = vld [vmem:[%s2906_s1 + $0x98] sm:$0xff]  ;;  %v2007_v22 = vld [vmem:[%s2906_s1 + $0x90] sm:$0xff]  ;;  %p2115_p11 = scmp.ne.s32.totalorder %s2113_s22, %s2114_s11  ;;  %p2120_p1 = scmp.lt.s32.totalorder %s2118_s14, %s2114_s11 }
  0x1a   : > { %971 = vmatpush.bf16.msra.mxu2 %v2011_v6  ;;  %v2017_v15 = vld [vmem:[%s2906_s1 + $0xe0] sm:$0xff]  ;;  %v2016_v19 = vld [vmem:[%s2906_s1 + $0xd8] sm:$0xff]  ;;  %v2015_v23 = vld [vmem:[%s2906_s1 + $0xd0] sm:$0xff] }
  0x1b   : > { %999 = vmatpush.bf16.msra.mxu3 %v2019_v7  ;;  %v1990_v24 = vld [vmem:[%s2906_s1 + $0x8] sm:$0xff]  ;;  %v1989_v28 = vld [vmem:[%s2906_s1] sm:$0xff]  ;;  %v2044_v40 = vld [vmem:[%s2906_s1 + $0x1b8] sm:$0xff]  ;;  %p2116_p12 = pnand %p2115_p11, %p2230_p5  ;;  %p2121_p2 = por %p2120_p1, %p2119_p0 }
  0x1c   : > { %916 = vmatpush.bf16.msra.mxu0 %v1994_v8  ;;  %v1998_v25 = vld [vmem:[%s2906_s1 + $0x48] sm:$0xff]  ;;  %v1997_v29 = vld [vmem:[%s2906_s1 + $0x40] sm:$0xff]  ;;  %v2028_v41 = vld [vmem:[%s2906_s1 + $0x138] sm:$0xff] }
  0x1d   : > { %944 = vmatpush.bf16.msra.mxu1 %v2002_v9  ;;  %v2006_v26 = vld [vmem:[%s2906_s1 + $0x88] sm:$0xff]  ;;  %v2005_v30 = vld [vmem:[%s2906_s1 + $0x80] sm:$0xff]  ;;  %v2052_v46 = vld [vmem:[%s2906_s1 + $0x1f8] sm:$0xff]  ;;  %p2117_p13 = pneg %p2116_p12 }
  0x1e   : > { %972 = vmatpush.bf16.msra.mxu2 %v2010_v10  ;;  %v2014_v27 = vld [vmem:[%s2906_s1 + $0xc8] sm:$0xff]  ;;  %v2013_v31 = vld [vmem:[%s2906_s1 + $0xc0] sm:$0xff]  ;;  %v2036_v47 = vld [vmem:[%s2906_s1 + $0x178] sm:$0xff] }
  0x1f   : > { %1000 = vmatpush.bf16.msra.mxu3 %v2018_v11  ;;  %v1532_v32 = vld [vmem:[%s2323_s13] sm:$0xf]  ;;  %v1965_v34 = vld [vmem:[%s2323_s13 + $0x4] sm:$0xf]  ;;  %v1540_v36 = vld [vmem:[%s2323_s13 + $0x8] sm:$0xf]  ;;  %p2122_p3 = pnand %p2121_p2, %p2117_p13 }
  0x20   : > { %917 = vmatpush.bf16.msra.mxu0 %v1993_v12  ;;  %v1969_v33 = vld [vmem:[%s2323_s13 + $0x1c] sm:$0xf0]  ;;  %v1534_v35 = vld [vmem:[%s2323_s13 + $0x20] sm:$0xf0]  ;;  %v1970_v37 = vld [vmem:[%s2323_s13 + $0x24] sm:$0xf0] }
  0x21   : > { %945 = vmatpush.bf16.msra.mxu1 %v2001_v13  ;;  %v1966_v38 = vld [vmem:[%s2323_s13 + $0xc] sm:$0xf]  ;;  %v1533_v42 = vor.u32 %v1969_v33, %v1532_v32  ;;  %v1537_v43 = vor.u32 %v1965_v34, %v1534_v35  ;;  %v1541_v44 = vor.u32 %v1970_v37, %v1540_v36  ;;  %v2043_v48 = vld [vmem:[%s2906_s1 + $0x1b0] sm:$0xff]  ;;  %v1564_v56 = vld [vmem:[%s2323_s13 + $0x40] sm:$0xf] }
  0x22   : > { %973 = vmatpush.bf16.msra.mxu2 %v2009_v14  ;;  %v1542_v39 = vld [vmem:[%s2323_s13 + $0x28] sm:$0xf0]  ;;  %v2027_v49 = vld [vmem:[%s2906_s1 + $0x130] sm:$0xff]  ;;  %v2041_v57 = vld [vmem:[%s2906_s1 + $0x1a0] sm:$0xff] }
  0x23   : > { %1001 = vmatpush.bf16.msra.mxu3 %v2017_v15  ;;  %v1545_v45 = vor.u32 %v1966_v38, %v1542_v39  ;;  %v2051_v50 = vld [vmem:[%s2906_s1 + $0x1f0] sm:$0xff]  ;;  %v2042_v52 = vld [vmem:[%s2906_s1 + $0x1a8] sm:$0xff]  ;;  %v2025_v58 = vld [vmem:[%s2906_s1 + $0x120] sm:$0xff] }
  0x24   : > { %918 = vmatpush.bf16.msra.mxu0 %v1992_v16  ;;  %v2035_v51 = vld [vmem:[%s2906_s1 + $0x170] sm:$0xff]  ;;  %v2026_v53 = vld [vmem:[%s2906_s1 + $0x128] sm:$0xff]  ;;  %v1977_v59 = vld [vmem:[%s2323_s13 + $0x5c] sm:$0xf0] }
  0x25   : > { %946 = vmatpush.bf16.msra.mxu1 %v2000_v17  ;;  %v2050_v54 = vld [vmem:[%s2906_s1 + $0x1e8] sm:$0xff]  ;;  %v1973_v60 = vld [vmem:[%s2323_s13 + $0x44] sm:$0xf]  ;;  %v2040_v4 = vld [vmem:[%s2906_s1 + $0x198] sm:$0xff]  ;;  %v1565_v6 = vor.u32 %v1977_v59, %v1564_v56 }
  0x26   : > { %974 = vmatpush.bf16.msra.mxu2 %v2008_v18  ;;  %v2034_v55 = vld [vmem:[%s2906_s1 + $0x168] sm:$0xff]  ;;  %v1566_v61 = vld [vmem:[%s2323_s13 + $0x60] sm:$0xf0]  ;;  %v2024_v5 = vld [vmem:[%s2906_s1 + $0x118] sm:$0xff] }
  0x27   : > { %1002 = vmatpush.bf16.msra.mxu3 %v2016_v19  ;;  %v1572_v62 = vld [vmem:[%s2323_s13 + $0x48] sm:$0xf]  ;;  %v1974_v0 = vld [vmem:[%s2323_s13 + $0x4c] sm:$0xf]  ;;  %v2049_v2 = vld [vmem:[%s2906_s1 + $0x1e0] sm:$0xff]  ;;  %v1569_v7 = vor.u32 %v1973_v60, %v1566_v61 }
  0x28   : > { %919 = vmatpush.bf16.msra.mxu0 %v1991_v20  ;;  %v1978_v63 = vld [vmem:[%s2323_s13 + $0x64] sm:$0xf0]  ;;  %v1574_v1 = vld [vmem:[%s2323_s13 + $0x68] sm:$0xf0]  ;;  %v2033_v3 = vld [vmem:[%s2906_s1 + $0x160] sm:$0xff] }
  0x29   : > { %947 = vmatpush.bf16.msra.mxu1 %v1999_v21  ;;  %v1573_v8 = vor.u32 %v1978_v63, %v1572_v62  ;;  %v1577_v9 = vor.u32 %v1974_v0, %v1574_v1  ;;  %v2048_v10 = vld [vmem:[%s2906_s1 + $0x1d8] sm:$0xff]  ;;  %v2039_v12 = vld [vmem:[%s2906_s1 + $0x190] sm:$0xff]  ;;  %v2038_v16 = vld [vmem:[%s2906_s1 + $0x188] sm:$0xff] }
  0x2a   : > { %975 = vmatpush.bf16.msra.mxu2 %v2007_v22  ;;  %v2032_v11 = vld [vmem:[%s2906_s1 + $0x158] sm:$0xff]  ;;  %v2023_v13 = vld [vmem:[%s2906_s1 + $0x110] sm:$0xff]  ;;  %v2022_v17 = vld [vmem:[%s2906_s1 + $0x108] sm:$0xff] }
  0x2b   : > { %1003 = vmatpush.bf16.msra.mxu3 %v2015_v23  ;;  %v2047_v14 = vld [vmem:[%s2906_s1 + $0x1d0] sm:$0xff]  ;;  %v2046_v18 = vld [vmem:[%s2906_s1 + $0x1c8] sm:$0xff]  ;;  %v1596_v20 = vld [vmem:[%s2323_s13 + $0x80] sm:$0xf] }
  0x2c   : > { %920 = vmatpush.bf16.msra.mxu0 %v1990_v24  ;;  %v2031_v15 = vld [vmem:[%s2906_s1 + $0x150] sm:$0xff]  ;;  %v2030_v19 = vld [vmem:[%s2906_s1 + $0x148] sm:$0xff]  ;;  %v2037_v21 = vld [vmem:[%s2906_s1 + $0x180] sm:$0xff] }
  0x2d   : > { %948 = vmatpush.bf16.msra.mxu1 %v1998_v25  ;;  %v2021_v22 = vld [vmem:[%s2906_s1 + $0x100] sm:$0xff]  ;;  %v247_v37 = vld [vmem:[%s2323_s13 + $0xc8] sm:$0x77]  ;;  %v1979_v59 = vld [vmem:[%s2323_s13 + $0x6c] sm:$0xf0] }
  0x2e   : > { %976 = vmatpush.bf16.msra.mxu2 %v2006_v26  ;;  %v1985_v23 = vld [vmem:[%s2323_s13 + $0x9c] sm:$0xf0]  ;;  %v1981_v24 = vld [vmem:[%s2323_s13 + $0x84] sm:$0xf]  ;;  %v1604_v26 = vld [vmem:[%s2323_s13 + $0x88] sm:$0xf] }
  0x2f   : > { %1004 = vmatpush.bf16.msra.mxu3 %v2014_v27  ;;  %v1598_v25 = vld [vmem:[%s2323_s13 + $0xa0] sm:$0xf0]  ;;  %v1986_v27 = vld [vmem:[%s2323_s13 + $0xa4] sm:$0xf0]  ;;  %v1597_v32 = vor.u32 %v1985_v23, %v1596_v20  ;;  %v1975_v60 = vld [vmem:[%s2323_s13 + $0x54] sm:$0xf] }
  0x30   : > { %921 = vmatpush.bf16.msra.mxu0 %v1989_v28  ;;  %v1982_v28 = vld [vmem:[%s2323_s13 + $0x8c] sm:$0xf]  ;;  %v1601_v33 = vor.u32 %v1981_v24, %v1598_v25  ;;  %v1605_v34 = vor.u32 %v1986_v27, %v1604_v26  ;;  %v246_v36 = vld [vmem:[%s2323_s13 + $0xc0] sm:$0x77]  ;;  %v1582_v61 = vld [vmem:[%s2323_s13 + $0x70] sm:$0xf0] }
  0x31   : > { %949 = vmatpush.bf16.msra.mxu1 %v1997_v29  ;;  %v1606_v29 = vld [vmem:[%s2323_s13 + $0xa8] sm:$0xf0]  ;;  %v458_v38 = vunpack.c.l.b16 %v246_v36  ;;  %v459_v39 = vunpack.c.h.b16 %v246_v36  ;;  %v1588_v62 = vld [vmem:[%s2323_s13 + $0x58] sm:$0xf]  ;;  %v1976_v0 = vld [vmem:[%s2323_s13 + $0x5c] sm:$0xf] }
  0x32   : > { %977 = vmatpush.bf16.msra.mxu2 %v2005_v30  ;;  %v2045_v30 = vld [vmem:[%s2906_s1 + $0x1c0] sm:$0xff]  ;;  %v1609_v35 = vor.u32 %v1982_v28, %v1606_v29  ;;  %v1980_v63 = vld [vmem:[%s2323_s13 + $0x74] sm:$0xf0]  ;;  %v1590_v1 = vld [vmem:[%s2323_s13 + $0x78] sm:$0xf0] }
  0x33   : > { %1005 = vmatpush.bf16.msra.mxu3 %v2013_v31  ;;  %922 = vmatmul.bf16.vlgmr.msra.gmra.mxu0 %v1533_v42  ;;  %v2029_v31 = vld [vmem:[%s2906_s1 + $0x140] sm:$0xff]  ;;  %v490_v42 = vpack.c.b16 %v458_v38, %v458_v38 }
  0x34   : > { %1026 = vmatpush.bf16.msrb.mxu0 %v2028_v41  ;;  %950 = vmatmul.bf16.vlgmr.msra.gmra.mxu1 %v1537_v43  ;;  %v461_v41 = vunpack.c.h.b16 %v247_v37  ;;  %v491_v43 = vpack.c.b16 %v459_v39, %v459_v39  ;;  %v2494_v28 = vld [vmem:[%s2907_s2] ss:$0 sm:$0xff] }
  0x35   : > { %978 = vmatmul.bf16.vlgmr.msra.gmra.mxu2 %v1541_v44  ;;  %1054 = vmatpush.bf16.msrb.mxu1 %v2036_v47  ;;  %v1971_v47 = vld [vmem:[%s2323_s13 + $0x2c] sm:$0xf0] }
  0x36   : > { %1082 = vmatpush.bf16.msrb.mxu2 %v2044_v40  ;;  %1006 = vmatmul.bf16.vlgmr.msra.gmra.mxu3 %v1545_v45  ;;  %v460_v40 = vunpack.c.l.b16 %v247_v37  ;;  %v493_v45 = vpack.c.b16 %v461_v41, %v461_v41 }
  0x37   : > { %1110 = vmatpush.bf16.msrb.mxu3 %v2052_v46  ;;  %v1548_v46 = vld [vmem:[%s2323_s13 + $0x10] sm:$0xf] }
  0x38   : > { %1027 = vmatpush.bf16.msrb.mxu0 %v2027_v49  ;;  %v492_v44 = vpack.c.b16 %v460_v40, %v460_v40  ;;  %v1550_v49 = vld [vmem:[%s2323_s13 + $0x30] sm:$0xf0] }
  0x39   : > { %1055 = vmatpush.bf16.msrb.mxu1 %v2035_v51  ;;  %v1972_v51 = vld [vmem:[%s2323_s13 + $0x34] sm:$0xf0] }
  0x3a   : > { %1083 = vmatpush.bf16.msrb.mxu2 %v2043_v48  ;;  %v1967_v48 = vld [vmem:[%s2323_s13 + $0x14] sm:$0xf] }
  0x3b   : > { %1111 = vmatpush.bf16.msrb.mxu3 %v2051_v50  ;;  %v1556_v50 = vld [vmem:[%s2323_s13 + $0x18] sm:$0xf] }
  0x3c   : > { %1028 = vmatpush.bf16.msrb.mxu0 %v2026_v53  ;;  %v1558_v53 = vld [vmem:[%s2323_s13 + $0x38] sm:$0xf0]  ;;  %v1557_v56 = vor.u32 %v1972_v51, %v1556_v50 }
  0x3d   : > { %1056 = vmatpush.bf16.msrb.mxu1 %v2034_v55  ;;  %v1553_v55 = vor.u32 %v1967_v48, %v1550_v49  ;;  %v1913_v51 = vld [vmem:[%s2908_s3 + $0x178] sm:$0xff] }
  0x3e   : > { %1084 = vmatpush.bf16.msrb.mxu2 %v2042_v52  ;;  %v1968_v52 = vld [vmem:[%s2323_s13 + $0x1c] sm:$0xf] }
  0x3f   : > { %1112 = vmatpush.bf16.msrb.mxu3 %v2050_v54  ;;  %v1549_v54 = vor.u32 %v1971_v47, %v1548_v46 }
  0x40   : > { %1029 = vmatpush.bf16.msrb.mxu0 %v2025_v58  ;;  %v1580_v58 = vld [vmem:[%s2323_s13 + $0x50] sm:$0xf] }
  0x41   : > { %1057 = vmatpush.bf16.msrb.mxu1 %v2033_v3  ;;  %v1585_v3 = vor.u32 %v1975_v60, %v1582_v61  ;;  %v1168_v61 = vld [vmem:[%s2908_s3 + $0x68] sm:$0xff] }
  0x42   : > { %1085 = vmatpush.bf16.msrb.mxu2 %v2041_v57  ;;  %v1561_v57 = vor.u32 %v1968_v52, %v1558_v53  ;;  %v1170_v52 = vld [vmem:[%s2908_s3 + $0x78] sm:$0xff] }
  0x43   : > { %1113 = vmatpush.bf16.msrb.mxu3 %v2049_v2  ;;  %927 = vmatmul.bf16.gmra.mxu0 %v1565_v6  ;;  %v1581_v2 = vor.u32 %v1979_v59, %v1580_v58  ;;  %v1612_v6 = vld [vmem:[%s2323_s13 + $0x90] sm:$0xf]  ;;  %v1929_v53 = vld [vmem:[%s2908_s3 + $0x1f8] sm:$0xff] }
  0x44   : > { %1030 = vmatpush.bf16.msrb.mxu0 %v2024_v5  ;;  %955 = vmatmul.bf16.gmra.mxu1 %v1569_v7  ;;  %v1593_v5 = vor.u32 %v1976_v0, %v1590_v1  ;;  %v1987_v7 = vld [vmem:[%s2323_s13 + $0xac] sm:$0xf0]  ;;  %v1911_v1 = vld [vmem:[%s2908_s3 + $0x168] sm:$0xff] }
  0x45   : > { %983 = vmatmul.bf16.gmra.mxu2 %v1573_v8  ;;  %1058 = vmatpush.bf16.msrb.mxu1 %v2032_v11  ;;  %v1983_v8 = vld [vmem:[%s2323_s13 + $0x94] sm:$0xf]  ;;  %v1988_v11 = vld [vmem:[%s2323_s13 + $0xb4] sm:$0xf0] }
  0x46   : > { %1086 = vmatpush.bf16.msrb.mxu2 %v2040_v4  ;;  %1011 = vmatmul.bf16.gmra.mxu3 %v1577_v9  ;;  %v1589_v4 = vor.u32 %v1980_v63, %v1588_v62  ;;  %v1614_v9 = vld [vmem:[%s2323_s13 + $0xb0] sm:$0xf0]  ;;  %v1167_v62 = vld [vmem:[%s2908_s3 + $0x60] sm:$0xff] }
  0x47   : > { %1114 = vmatpush.bf16.msrb.mxu3 %v2048_v10  ;;  %v1620_v10 = vld [vmem:[%s2323_s13 + $0x98] sm:$0xf]  ;;  %v1169_v58 = vld [vmem:[%s2908_s3 + $0x70] sm:$0xff] }
  0x48   : > { %1031 = vmatpush.bf16.msrb.mxu0 %v2023_v13  ;;  %v1622_v13 = vld [vmem:[%s2323_s13 + $0xb8] sm:$0xf0]  ;;  %v1928_v63 = vld [vmem:[%s2908_s3 + $0x1f0] sm:$0xff] }
  0x49   : > { %1059 = vmatpush.bf16.msrb.mxu1 %v2031_v15  ;;  %v1617_v15 = vor.u32 %v1983_v8, %v1614_v9  ;;  %v1896_v0 = vld [vmem:[%s2908_s3 + $0xf0] sm:$0xff] }
  0x4a   : > { %1087 = vmatpush.bf16.msrb.mxu2 %v2039_v12  ;;  %v1984_v12 = vld [vmem:[%s2323_s13 + $0x9c] sm:$0xf]  ;;  %v1165_v8 = vld [vmem:[%s2908_s3 + $0x50] sm:$0xff] }
  0x4b   : > { %1115 = vmatpush.bf16.msrb.mxu3 %v2047_v14  ;;  %v1613_v14 = vor.u32 %v1987_v7, %v1612_v6 }
  0x4c   : > { %1032 = vmatpush.bf16.msrb.mxu0 %v2022_v17  ;;  %v1625_v17 = vor.u32 %v1984_v12, %v1622_v13  ;;  %v1894_v12 = vld [vmem:[%s2908_s3 + $0xe0] sm:$0xff] }
  0x4d   : > { %1060 = vmatpush.bf16.msrb.mxu1 %v2030_v19  ;;  %v249_v19 = vld [vmem:[%s2323_s13 + $0xd8] sm:$0x77]  ;;  %v1163_v13 = vld [vmem:[%s2908_s3 + $0x40] sm:$0xff] }
  0x4e   : > { %1088 = vmatpush.bf16.msrb.mxu2 %v2038_v16  ;;  %v1621_v16 = vor.u32 %v1988_v11, %v1620_v10  ;;  %v465_v23 = vunpack.c.h.b16 %v249_v19  ;;  %v1164_v11 = vld [vmem:[%s2908_s3 + $0x48] sm:$0xff] }
  0x4f   : > { %1116 = vmatpush.bf16.msrb.mxu3 %v2046_v18  ;;  %v248_v18 = vld [vmem:[%s2323_s13 + $0xd0] sm:$0x77] }
  0x50   : > { %1033 = vmatpush.bf16.msrb.mxu0 %v2021_v22  ;;  %v462_v20 = vunpack.c.l.b16 %v248_v18  ;;  %v464_v22 = vunpack.c.l.b16 %v249_v19  ;;  %v497_v27 = vpack.c.b16 %v465_v23, %v465_v23  ;;  %v1892_v19 = vld [vmem:[%s2908_s3 + $0xd0] sm:$0xff]  ;;  %v1891_v23 = vld [vmem:[%s2908_s3 + $0xc8] sm:$0xff] }
  0x51   : > { %1061 = vmatpush.bf16.msrb.mxu1 %v2029_v31 }
  0x52   : > { %1089 = vmatpush.bf16.msrb.mxu2 %v2037_v21  ;;  %v463_v21 = vunpack.c.h.b16 %v248_v18  ;;  %v494_v24 = vpack.c.b16 %v462_v20, %v462_v20  ;;  %v496_v26 = vpack.c.b16 %v464_v22, %v464_v22  ;;  %v1161_v18 = vld [vmem:[%s2908_s3 + $0x30] sm:$0xff]  ;;  %v1160_v22 = vld [vmem:[%s2908_s3 + $0x28] sm:$0xff] }
  0x53   : > { %1117 = vmatpush.bf16.msrb.mxu3 %v2045_v30  ;;  %932 = vmatmul.bf16.gmra.mxu0 %v1597_v32 }
  0x54   : > { %960 = vmatmul.bf16.gmra.mxu1 %v1601_v33  ;;  %v495_v25 = vpack.c.b16 %v463_v21, %v463_v21  ;;  %1171 = vmatpush.msra.mxu0 %v1170_v52  ;;  %v1157_v52 = vld [vmem:[%s2908_s3 + $0x10] sm:$0xff] }
  0x55   : > { %988 = vmatmul.bf16.gmra.mxu2 %v1605_v34 }
  0x56   : > { %1016 = vmatmul.bf16.gmra.mxu3 %v1609_v35  ;;  %1269 = vmatpush.msra.mxu2 %v1913_v51 }
  0x57   : > { %1318 = vmatpush.msra.mxu3 %v1929_v53  ;;  %1172 = vmatpush.msra.mxu0 %v1169_v58  ;;  %v1888_v53 = vld [vmem:[%s2908_s3 + $0xb0] sm:$0xff] }
  0x59   : > { %1173 = vmatpush.msra.mxu0 %v1168_v61  ;;  %1319 = vmatpush.msra.mxu3 %v1928_v63  ;;  %v1156_v61 = vld [vmem:[%s2908_s3 + $0x8] sm:$0xff]  ;;  %v1886_v63 = vld [vmem:[%s2908_s3 + $0xa0] sm:$0xff] }
  0x5b   : > { %1174 = vmatpush.msra.mxu0 %v1167_v62  ;;  %v1906_v62 = vld [vmem:[%s2908_s3 + $0x140] sm:$0xff] }
  0x63   : > { %937 = vmatmul.bf16.gmra.mxu0 %v490_v42 }
  0x64   : > { %965 = vmatmul.bf16.gmra.mxu1 %v491_v43 }
  0x65   : > { %993 = vmatmul.bf16.gmra.mxu2 %v492_v44 }
  0x66   : > { %1021 = vmatmul.bf16.gmra.mxu3 %v493_v45 }
  0x73   : > { %1034 = vmatmul.bf16.vlgmr.msrb.gmra.mxu0 %v1549_v54  ;;  %v1897_v54 = vld [vmem:[%s2908_s3 + $0xf8] sm:$0xff] }
  0x74   : > { %1062 = vmatmul.bf16.vlgmr.msrb.gmra.mxu1 %v1553_v55  ;;  %v1912_v55 = vld [vmem:[%s2908_s3 + $0x170] sm:$0xff] }
  0x75   : > { %1090 = vmatmul.bf16.vlgmr.msrb.gmra.mxu2 %v1557_v56  ;;  %1220 = vmatpush.msra.mxu1 %v1897_v54  ;;  %v1907_v54 = vld [vmem:[%s2908_s3 + $0x148] sm:$0xff] }
  0x76   : > { %1118 = vmatmul.bf16.vlgmr.msrb.gmra.mxu3 %v1561_v57  ;;  %1270 = vmatpush.msra.mxu2 %v1912_v55  ;;  %v1887_v55 = vld [vmem:[%s2908_s3 + $0xa8] sm:$0xff] }
  0x77   : > { %1221 = vmatpush.msra.mxu1 %v1896_v0 }
  0x78   : > { %1271 = vmatpush.msra.mxu2 %v1911_v1  ;;  %v1155_v1 = vld [vmem:[%s2908_s3] sm:$0xff] }
  0x83   : > { %1039 = vmatmul.bf16.gmra.mxu0 %v1581_v2  ;;  %v1927_v2 = vld [vmem:[%s2908_s3 + $0x1e8] sm:$0xff] }
  0x84   : > { %1067 = vmatmul.bf16.gmra.mxu1 %v1585_v3  ;;  %v1895_v3 = vld [vmem:[%s2908_s3 + $0xe8] sm:$0xff]  ;;  %1320 = vmatpush.msra.mxu3 %v1927_v2  ;;  %v1905_v2 = vld [vmem:[%s2908_s3 + $0x138] sm:$0xff] }
  0x85   : > { %1095 = vmatmul.bf16.gmra.mxu2 %v1589_v4  ;;  %v1910_v4 = vld [vmem:[%s2908_s3 + $0x160] sm:$0xff]  ;;  %1222 = vmatpush.msra.mxu1 %v1895_v3  ;;  %v1885_v3 = vld [vmem:[%s2908_s3 + $0x98] sm:$0xff] }
  0x86   : > { %1123 = vmatmul.bf16.gmra.mxu3 %v1593_v5  ;;  %v1166_v5 = vld [vmem:[%s2908_s3 + $0x58] sm:$0xff]  ;;  %1272 = vmatpush.msra.mxu2 %v1910_v4 }
  0x87   : > { %1175 = vmatpush.msra.mxu0 %v1166_v5  ;;  %1223 = vmatpush.msra.mxu1 %v1894_v12  ;;  %v1904_v12 = vld [vmem:[%s2908_s3 + $0x130] sm:$0xff] }
  0x89   : > { %1176 = vmatpush.msra.mxu0 %v1165_v8  ;;  %v1924_v8 = vld [vmem:[%s2908_s3 + $0x1d0] sm:$0xff] }
  0x8b   : > { %1177 = vmatpush.msra.mxu0 %v1164_v11  ;;  %v1923_v11 = vld [vmem:[%s2908_s3 + $0x1c8] sm:$0xff] }
  0x8d   : > { %1178 = vmatpush.msra.mxu0 %v1163_v13 }
  0x93   : > { %1044 = vmatmul.bf16.gmra.mxu0 %v1613_v14  ;;  %v1893_v14 = vld [vmem:[%s2908_s3 + $0xd8] sm:$0xff] }
  0x94   : > { %1072 = vmatmul.bf16.gmra.mxu1 %v1617_v15  ;;  %v1162_v15 = vld [vmem:[%s2908_s3 + $0x38] sm:$0xff] }
  0x95   : > { %1100 = vmatmul.bf16.gmra.mxu2 %v1621_v16  ;;  %1224 = vmatpush.msra.mxu1 %v1893_v14 }
  0x96   : > { %1128 = vmatmul.bf16.gmra.mxu3 %v1625_v17  ;;  %1179 = vmatpush.msra.mxu0 %v1162_v15 }
  0x97   : > { %1225 = vmatpush.msra.mxu1 %v1892_v19  ;;  %v1944_v19 = vld [vmem:[%s2908_s3 + $0x270] sm:$0xff] }
  0x98   : > { %1180 = vmatpush.msra.mxu0 %v1161_v18  ;;  %v1884_v18 = vld [vmem:[%s2908_s3 + $0x90] sm:$0xff] }
  0x99   : > { %1226 = vmatpush.msra.mxu1 %v1891_v23  ;;  %v1922_v23 = vld [vmem:[%s2908_s3 + $0x1c0] sm:$0xff] }
  0x9a   : > { %1181 = vmatpush.msra.mxu0 %v1160_v22 }
  0xa3   : > { %1049 = vmatmul.bf16.gmra.mxu0 %v494_v24  ;;  %v1159_v24 = vld [vmem:[%s2908_s3 + $0x20] sm:$0xff] }
  0xa4   : > { %1077 = vmatmul.bf16.gmra.mxu1 %v495_v25  ;;  %v1890_v25 = vld [vmem:[%s2908_s3 + $0xc0] sm:$0xff]  ;;  %1182 = vmatpush.msra.mxu0 %v1159_v24 }
  0xa5   : > { %1105 = vmatmul.bf16.gmra.mxu2 %v496_v26  ;;  %1227 = vmatpush.msra.mxu1 %v1890_v25  ;;  %v1909_v26 = vld [vmem:[%s2908_s3 + $0x158] sm:$0xff]  ;;  %v1882_v24 = vld [vmem:[%s2908_s3 + $0x80] sm:$0xff] }
  0xa6   : > { %1133 = vmatmul.bf16.gmra.mxu3 %v497_v27  ;;  %v1889_v27 = vld [vmem:[%s2908_s3 + $0xb8] sm:$0xff]  ;;  %1273 = vmatpush.msra.mxu2 %v1909_v26  ;;  %v1902_v25 = vld [vmem:[%s2908_s3 + $0x120] sm:$0xff] }
  0xa7   : > { %1228 = vmatpush.msra.mxu1 %v1889_v27  ;;  %v1942_v27 = vld [vmem:[%s2908_s3 + $0x260] sm:$0xff] }
  0xa9   : > { %1229 = vmatpush.msra.mxu1 %v1888_v53 }
  0xab   : > { %1230 = vmatpush.msra.mxu1 %v1887_v55 }
  0xad   : > { %1231 = vmatpush.msra.mxu1 %v1886_v63  ;;  %v1919_v63 = vld [vmem:[%s2908_s3 + $0x1a8] sm:$0xff] }
  0xaf   : > { %1232 = vmatpush.msra.mxu1 %v1885_v3  ;;  %v1959_v3 = vld [vmem:[%s2908_s3 + $0x2e8] sm:$0xff] }
  0xb0   : > { %v923_v29 = vpop.f32.mrf.mxu0 }
  0xb1   : > { %v951_v30 = vpop.f32.mrf.mxu1  ;;  %v924_v31 = vadd.f32 %v2494_v28, %v923_v29  ;;  %1233 = vmatpush.msra.mxu1 %v1884_v18 }
  0xb3   : > { %v952_v32 = vadd.f32 %v951_v30, %v924_v31  ;;  %v1158_v30 = vld [vmem:[%s2908_s3 + $0x18] sm:$0xff] }
  0xb4   : > { %1183 = vmatpush.msra.mxu0 %v1158_v30  ;;  %v1921_v30 = vld [vmem:[%s2908_s3 + $0x1b8] sm:$0xff] }
  0xb6   : > { %1184 = vmatpush.msra.mxu0 %v1157_v52 }
  0xb8   : > { %v979_v33 = vpop.f32.mrf.mxu2  ;;  %v2497_v36 = vpop.f32.mrf.mxu0  ;;  %1185 = vmatpush.msra.mxu0 %v1156_v61  ;;  %v1960_v61 = vld [vmem:[%s2908_s3 + $0x2f0] sm:$0xff] }
  0xb9   : > { %v1007_v34 = vpop.f32.mrf.mxu3  ;;  %v980_v35 = vadd.f32 %v979_v33, %v952_v32  ;;  %v2499_v37 = vpop.f32.mrf.mxu1  ;;  %v926_v29 = vadd.f32 %v2494_v28, %v2497_v36  ;;  %v1926_v33 = vld [vmem:[%s2908_s3 + $0x1e0] sm:$0xff] }
  0xba   : > { %1321 = vmatpush.msra.mxu3 %v1926_v33  ;;  %1186 = vmatpush.msra.mxu0 %v1155_v1  ;;  %v1941_v33 = vld [vmem:[%s2908_s3 + $0x258] sm:$0xff] }
  0xbb   : > { %v2501_v38 = vadd.f32 %v1007_v34, %v980_v35  ;;  %v1925_v34 = vld [vmem:[%s2908_s3 + $0x1d8] sm:$0xff]  ;;  %v1908_v35 = vld [vmem:[%s2908_s3 + $0x150] sm:$0xff]  ;;  %v954_v58 = vadd.f32 %v2499_v37, %v926_v29 }
  0xbc   : > { %1274 = vmatpush.msra.mxu2 %v1908_v35  ;;  %1322 = vmatpush.msra.mxu3 %v1925_v34  ;;  %v1961_v34 = vld [vmem:[%s2908_s3 + $0x2f8] sm:$0xff] }
  0xbe   : > { %1275 = vmatpush.msra.mxu2 %v1907_v54  ;;  %1323 = vmatpush.msra.mxu3 %v1924_v8  ;;  %v1938_v8 = vld [vmem:[%s2908_s3 + $0x240] sm:$0xff] }
  0xc0   : > { %v2503_v39 = vpop.f32.mrf.mxu2  ;;  %v2507_v41 = vpop.f32.mrf.mxu0  ;;  %1276 = vmatpush.msra.mxu2 %v1906_v62  ;;  %1324 = vmatpush.msra.mxu3 %v1923_v11  ;;  %v1958_v11 = vld [vmem:[%s2908_s3 + $0x2e0] sm:$0xff] }
  0xc1   : > { %v2505_v40 = vpop.f32.mrf.mxu3  ;;  %v2509_v42 = vpop.f32.mrf.mxu1  ;;  %v982_v0 = vadd.f32 %v2503_v39, %v954_v58  ;;  %v929_v37 = vadd.f32 %v2494_v28, %v2507_v41  ;;  %v1945_v39 = vld [vmem:[%s2908_s3 + $0x278] sm:$0xff]  ;;  %v1940_v58 = vld [vmem:[%s2908_s3 + $0x250] sm:$0xff] }
  0xc2   : > { %1277 = vmatpush.msra.mxu2 %v1905_v2  ;;  %1367 = vmatpush.msrb.mxu0 %v1945_v39  ;;  %v1939_v2 = vld [vmem:[%s2908_s3 + $0x248] sm:$0xff]  ;;  %v1918_v39 = vld [vmem:[%s2908_s3 + $0x1a0] sm:$0xff] }
  0xc3   : > { %v1010_v13 = vadd.f32 %v2505_v40, %v982_v0  ;;  %v1903_v40 = vld [vmem:[%s2908_s3 + $0x128] sm:$0xff]  ;;  %1325 = vmatpush.msra.mxu3 %v1922_v23 }
  0xc4   : > { %1278 = vmatpush.msra.mxu2 %v1904_v12  ;;  %1368 = vmatpush.msrb.mxu0 %v1944_v19 }
  0xc5   : > { %1326 = vmatpush.msra.mxu3 %v1921_v30  ;;  %v1935_v30 = vld [vmem:[%s2908_s3 + $0x228] sm:$0xff] }
  0xc6   : > { %1279 = vmatpush.msra.mxu2 %v1903_v40  ;;  %v1916_v40 = vld [vmem:[%s2908_s3 + $0x190] sm:$0xff] }
  0xc8   : > { %v2511_v43 = vpop.f32.mrf.mxu2  ;;  %v2515_v45 = vpop.f32.mrf.mxu0  ;;  %1280 = vmatpush.msra.mxu2 %v1902_v25  ;;  %v1936_v25 = vld [vmem:[%s2908_s3 + $0x230] sm:$0xff] }
  0xc9   : > { %v2513_v44 = vpop.f32.mrf.mxu3  ;;  %v2517_v46 = vpop.f32.mrf.mxu1 }
  0xd0   : > { %v2519_v47 = vpop.f32.mrf.mxu2  ;;  %v2523_v49 = vpop.f32.mrf.mxu0 }
  0xd1   : > { %v2521_v48 = vpop.f32.mrf.mxu3  ;;  %v2525_v50 = vpop.f32.mrf.mxu1 }
  0xd8   : > { %v2542_v56 = vpop.f32.mrf.mxu2  ;;  %v2549_v59 = vpop.f32.mrf.mxu0 }
  0xd9   : > { %v2544_v57 = vpop.f32.mrf.mxu3  ;;  %v2551_v60 = vpop.f32.mrf.mxu1 }
  0xe0   : > { %v2580_v6 = vpop.f32.mrf.mxu2  ;;  %v2587_v9 = vpop.f32.mrf.mxu0 }
  0xe1   : > { %v2582_v7 = vpop.f32.mrf.mxu3  ;;  %v2589_v10 = vpop.f32.mrf.mxu1 }
  0xe8   : > { %v2606_v16 = vpop.f32.mrf.mxu2  ;;  %v940_v20 = vpop.f32.mrf.mxu0 }
  0xe9   : > { %v2608_v17 = vpop.f32.mrf.mxu3  ;;  %v968_v21 = vpop.f32.mrf.mxu1 }
  0xea   : > { %v1943_v21 = vld [vmem:[%s2908_s3 + $0x268] sm:$0xff] }
  0xeb   : > { %1369 = vmatpush.msrb.mxu0 %v1943_v21 }
  0xed   : > { %1370 = vmatpush.msrb.mxu0 %v1942_v27  ;;  %v1915_v27 = vld [vmem:[%s2908_s3 + $0x188] sm:$0xff] }
  0xef   : > { %1371 = vmatpush.msrb.mxu0 %v1941_v33 }
  0xf0   : > { %v996_v31 = vpop.f32.mrf.mxu2  ;;  %v1035_v36 = vpop.f32.mrf.mxu0 }
  0xf1   : > { %v1024_v32 = vpop.f32.mrf.mxu3  ;;  %v1063_v51 = vpop.f32.mrf.mxu1  ;;  %v1036_v41 = vadd.f32 %v1035_v36, %v2501_v38  ;;  %v957_v38 = vadd.f32 %v2509_v42, %v929_v37  ;;  %v1883_v42 = vld [vmem:[%s2908_s3 + $0x88] sm:$0xff]  ;;  %v1901_v31 = vld [vmem:[%s2908_s3 + $0x118] sm:$0xff]  ;;  %1372 = vmatpush.msrb.mxu0 %v1940_v58 }
  0xf2   : > { %1234 = vmatpush.msra.mxu1 %v1883_v42  ;;  %1281 = vmatpush.msra.mxu2 %v1901_v31  ;;  %v1956_v42 = vld [vmem:[%s2908_s3 + $0x2d0] sm:$0xff] }
  0xf3   : > { %v1064_v22 = vadd.f32 %v1063_v51, %v1036_v41  ;;  %v985_v26 = vadd.f32 %v2511_v43, %v957_v38  ;;  %v931_v43 = vadd.f32 %v2494_v28, %v2515_v45  ;;  %v1920_v51 = vld [vmem:[%s2908_s3 + $0x1b0] sm:$0xff]  ;;  %1373 = vmatpush.msrb.mxu0 %v1939_v2 }
  0xf4   : > { %1235 = vmatpush.msra.mxu1 %v1882_v24  ;;  %v1900_v45 = vld [vmem:[%s2908_s3 + $0x110] sm:$0xff]  ;;  %1327 = vmatpush.msra.mxu3 %v1920_v51  ;;  %v1953_v51 = vld [vmem:[%s2908_s3 + $0x2b8] sm:$0xff] }
  0xf5   : > { %v1013_v52 = vadd.f32 %v2513_v44, %v985_v26  ;;  %1282 = vmatpush.msra.mxu2 %v1900_v45  ;;  %v1899_v44 = vld [vmem:[%s2908_s3 + $0x108] sm:$0xff]  ;;  %v959_v0 = vadd.f32 %v2517_v46, %v931_v43  ;;  %v1898_v46 = vld [vmem:[%s2908_s3 + $0x100] sm:$0xff]  ;;  %1374 = vmatpush.msrb.mxu0 %v1938_v8  ;;  %v936_v45 = vadd.f32 %v2494_v28, %v2549_v59 }
  0xf6   : > { %1416 = vmatpush.msrb.mxu1 %v1961_v34  ;;  %1328 = vmatpush.msra.mxu3 %v1919_v63  ;;  %v1914_v43 = vld [vmem:[%s2908_s3 + $0x180] sm:$0xff]  ;;  %v1952_v63 = vld [vmem:[%s2908_s3 + $0x2b0] sm:$0xff]  ;;  %v1931_v8 = vld [vmem:[%s2908_s3 + $0x208] sm:$0xff] }
  0xf7   : > { %1283 = vmatpush.msra.mxu2 %v1899_v44  ;;  %v987_v41 = vadd.f32 %v2519_v47, %v959_v0  ;;  %v1917_v47 = vld [vmem:[%s2908_s3 + $0x198] sm:$0xff] }
  0xf8   : > { %v1091_v4 = vpop.f32.mrf.mxu2  ;;  %v1037_v14 = vpop.f32.mrf.mxu0  ;;  %1417 = vmatpush.msrb.mxu1 %v1960_v61  ;;  %1329 = vmatpush.msra.mxu3 %v1918_v39  ;;  %v1951_v39 = vld [vmem:[%s2908_s3 + $0x2a8] sm:$0xff] }
  0xf9   : > { %v1119_v5 = vpop.f32.mrf.mxu3  ;;  %v1065_v15 = vpop.f32.mrf.mxu1  ;;  %v1038_v20 = vadd.f32 %v1037_v14, %v1010_v13  ;;  %v1092_v29 = vadd.f32 %v1091_v4, %v1064_v22  ;;  %v934_v4 = vadd.f32 %v2494_v28, %v2523_v49  ;;  %1284 = vmatpush.msra.mxu2 %v1898_v46  ;;  %v1957_v49 = vld [vmem:[%s2908_s3 + $0x2d8] sm:$0xff]  ;;  %v964_v46 = vadd.f32 %v2551_v60, %v936_v45 }
  0xfa   : > { %1418 = vmatpush.msrb.mxu1 %v1959_v3  ;;  %1330 = vmatpush.msra.mxu3 %v1917_v47  ;;  %v1937_v14 = vld [vmem:[%s2908_s3 + $0x238] sm:$0xff]  ;;  %v939_v60 = vadd.f32 %v2494_v28, %v2587_v9  ;;  %v1948_v9 = vld [vmem:[%s2908_s3 + $0x290] sm:$0xff] }
  0xfb   : > { %v1066_v32 = vadd.f32 %v1065_v15, %v1038_v20  ;;  %v1120_v62 = vadd.f32 %v1119_v5, %v1092_v29  ;;  %v1015_v20 = vadd.f32 %v2521_v48, %v987_v41  ;;  %v962_v21 = vadd.f32 %v2525_v50, %v934_v4  ;;  %1375 = vmatpush.msrb.mxu0 %v1937_v14  ;;  %v1955_v48 = vld [vmem:[%s2908_s3 + $0x2c8] sm:$0xff] }
  0xfc   : > { %1419 = vmatpush.msrb.mxu1 %v1958_v11  ;;  %1331 = vmatpush.msra.mxu3 %v1916_v40  ;;  %v1950_v11 = vld [vmem:[%s2908_s3 + $0x2a0] sm:$0xff] }
  0xfd   : > { %v1138_v12 = vmax.f32 %v1120_v62, 0.0  ;;  %1376 = vmatpush.msrb.mxu0 %v1936_v25  ;;  %v990_v33 = vadd.f32 %v2542_v56, %v962_v21  ;;  %v1933_v56 = vld [vmem:[%s2908_s3 + $0x218] sm:$0xff] }
  0xfe   : > { %1420 = vmatpush.msrb.mxu1 %v1957_v49  ;;  %1332 = vmatpush.msra.mxu3 %v1915_v27 }
  0xff   : > { %1377 = vmatpush.msrb.mxu0 %v1935_v30  ;;  %v1018_v44 = vadd.f32 %v2544_v57, %v990_v33 }
 0x100   : > { %v1093_v35 = vpop.f32.mrf.mxu2  ;;  %v1040_v54 = vpop.f32.mrf.mxu0  ;;  %1421 = vmatpush.msrb.mxu1 %v1956_v42  ;;  %1333 = vmatpush.msra.mxu3 %v1914_v43 }
 0x101   : > { %v1121_v36 = vpop.f32.mrf.mxu3  ;;  %v1094_v53 = vadd.f32 %v1093_v35, %v1066_v32  ;;  %v1068_v55 = vpop.f32.mrf.mxu1  ;;  %v1041_v1 = vadd.f32 %v1040_v54, %v1013_v52  ;;  %v1954_v32 = vld [vmem:[%s2908_s3 + $0x2c0] sm:$0xff] }
 0x102   : > { %1422 = vmatpush.msrb.mxu1 %v1955_v48  ;;  %v1934_v35 = vld [vmem:[%s2908_s3 + $0x220] sm:$0xff] }
 0x103   : > { %v2759_v37 = vadd.f32 %v1121_v36, %v1094_v53  ;;  %v1069_v38 = vadd.f32 %v1068_v55, %v1041_v1  ;;  %1378 = vmatpush.msrb.mxu0 %v1934_v35  ;;  %v1932_v1 = vld [vmem:[%s2908_s3 + $0x210] sm:$0xff] }
 0x104   : > { %1423 = vmatpush.msrb.mxu1 %v1954_v32 }
 0x105   : > { %v1139_v5 = vmax.f32 %v2759_v37, 0.0  ;;  %1379 = vmatpush.msrb.mxu0 %v1933_v56 }
 0x106   : > { %1424 = vmatpush.msrb.mxu1 %v1953_v51 }
 0x107   : > { %v1147_v13 = vsel %vm1146_vm0, %v1139_v5, -inf  ;;  %v1193_v52 = vsel %vm1192_vm1, %v1139_v5, -inf  ;;  %1380 = vmatpush.msrb.mxu0 %v1932_v1 }
 0x108   : > { %v1148_v15 = vmax.f32 %v1138_v12, %v1147_v13  ;;  %v1096_v18 = vpop.f32.mrf.mxu2  ;;  %v1042_v23 = vpop.f32.mrf.mxu0  ;;  %1425 = vmatpush.msrb.mxu1 %v1952_v63  ;;  %v992_v12 = vadd.f32 %v2580_v6, %v964_v46  ;;  %v1930_v13 = vld [vmem:[%s2908_s3 + $0x200] sm:$0xff] }
 0x109   : > { %v1124_v19 = vpop.f32.mrf.mxu3  ;;  %v1097_v22 = vadd.f32 %v1096_v18, %v1069_v38  ;;  %v1070_v24 = vpop.f32.mrf.mxu1  ;;  %v1043_v29 = vadd.f32 %v1042_v23, %v1015_v20  ;;  %v1949_v38 = vld [vmem:[%s2908_s3 + $0x298] sm:$0xff]  ;;  %1381 = vmatpush.msrb.mxu0 %v1931_v8  ;;  %v967_v20 = vadd.f32 %v2589_v10, %v939_v60 }
 0x10a   : > { %v1149_v26 = vrot.slane %v1148_v15, 4  ;;  %1426 = vmatpush.msrb.mxu1 %v1951_v39  ;;  %v1020_v42 = vadd.f32 %v2582_v7, %v992_v12  ;;  %v1946_v7 = vld [vmem:[%s2908_s3 + $0x280] sm:$0xff] }
 0x10b   : > { %v1125_v50 = vadd.f32 %v1124_v19, %v1097_v22  ;;  %v1071_v54 = vadd.f32 %v1070_v24, %v1043_v29  ;;  %1382 = vmatpush.msrb.mxu0 %v1930_v13  ;;  %v1947_v24 = vld [vmem:[%s2908_s3 + $0x288] sm:$0xff]  ;;  %v995_v10 = vadd.f32 %v2606_v16, %v967_v20 }
 0x10c   : > { %v1150_v31 = vmax.f32 %v1148_v15, %v1149_v26  ;;  %1427 = vmatpush.msrb.mxu1 %v1950_v11 }
 0x10d   : > { %v1140_v34 = vmax.f32 %v1125_v50, 0.0  ;;  %v1023_v45 = vadd.f32 %v2608_v17, %v995_v10 }
 0x10e   : > { %v1151_v36 = vrot.slane %v1150_v31, 2  ;;  %1428 = vmatpush.msrb.mxu1 %v1949_v38 }
 0x10f   : > { %v1195_v53 = vsel %vm1194_vm2, %v1140_v34, -inf  ;;  %v1242_v14 = vsel %vm1241_vm3, %v1140_v34, -inf }
 0x110   : > { %v1152_v55 = vmax.f32 %v1150_v31, %v1151_v36  ;;  %v1196_v58 = vmax.f32 %v1193_v52, %v1195_v53  ;;  %v1098_v61 = vpop.f32.mrf.mxu2  ;;  %v1045_v0 = vpop.f32.mrf.mxu0  ;;  %1429 = vmatpush.msrb.mxu1 %v1948_v9 }
 0x111   : > { %v1126_v62 = vpop.f32.mrf.mxu3  ;;  %v1099_v59 = vadd.f32 %v1098_v61, %v1071_v54  ;;  %v1073_v37 = vpop.f32.mrf.mxu1  ;;  %v1046_v4 = vadd.f32 %v1045_v0, %v1018_v44 }
 0x112   : > { %v1197_v2 = vrot.slane %v1196_v58, 4  ;;  %v1153_v3 = vrot.slane %v1152_v55, 1  ;;  %1430 = vmatpush.msrb.mxu1 %v1947_v24 }
 0x113   : > { %v1127_v41 = vadd.f32 %v1126_v62, %v1099_v59  ;;  %v1074_v18 = vadd.f32 %v1073_v37, %v1046_v4 }
 0x114   : > { %v1198_v57 = vmax.f32 %v1196_v58, %v1197_v2  ;;  %v1154_v5 = vmax.f32 %v1152_v55, %v1153_v3  ;;  %1431 = vmatpush.msrb.mxu1 %v1946_v7 }
 0x115   : > { %v1141_v47 = vmax.f32 %v1127_v41, 0.0 }
 0x116   : > { %v1199_v49 = vrot.slane %v1198_v57, 2  ;;  %1187 = vmatmul.f32.vlgmr.msra.gmra.mxu0 %v1154_v5 }
 0x117   : > { %v1244_v15 = vsel %vm1243_vm4, %v1141_v47, -inf  ;;  %v1291_v43 = vsel %vm1290_vm5, %v1141_v47, -inf }
 0x118   : > { %v1200_v6 = vmax.f32 %v1198_v57, %v1199_v49  ;;  %v1245_v19 = vmax.f32 %v1242_v14, %v1244_v15  ;;  %v1101_v40 = vpop.f32.mrf.mxu2  ;;  %v1047_v22 = vpop.f32.mrf.mxu0 }
 0x119   : > { %v1129_v28 = vpop.f32.mrf.mxu3  ;;  %v1102_v21 = vadd.f32 %v1101_v40, %v1074_v18  ;;  %v1075_v23 = vpop.f32.mrf.mxu1  ;;  %v1048_v48 = vadd.f32 %v1047_v22, %v1020_v42 }
 0x11a   : > { %v1246_v25 = vrot.slane %v1245_v19, 4  ;;  %v1201_v26 = vrot.slane %v1200_v6, 1 }
 0x11b   : > { %v1130_v27 = vadd.f32 %v1129_v28, %v1102_v21  ;;  %v1076_v33 = vadd.f32 %v1075_v23, %v1048_v48  ;;  %v1145_v21 = vld [vmem:[%s2909_s4] sm:$0x1] }
 0x11c   : > { %v1247_v50 = vmax.f32 %v1245_v19, %v1246_v25  ;;  %v1202_v29 = vmax.f32 %v1200_v6, %v1201_v26 }
 0x11d   : > { %v1142_v30 = vmax.f32 %v1130_v27, 0.0 }
 0x11e   : > { %v1248_v31 = vrot.slane %v1247_v50, 2  ;;  %1236 = vmatmul.f32.vlgmr.msra.gmra.mxu1 %v1202_v29 }
 0x11f   : > { %v1293_v32 = vsel %vm1292_vm6, %v1142_v30, -inf  ;;  %v1340_v59 = vsel %vm1339_vm7, %v1142_v30, -inf }
 0x120   : > { %v1249_v34 = vmax.f32 %v1247_v50, %v1248_v31  ;;  %v1294_v35 = vmax.f32 %v1291_v43, %v1293_v32  ;;  %v1103_v36 = vpop.f32.mrf.mxu2  ;;  %v1050_v53 = vpop.f32.mrf.mxu0 }
 0x121   : > { %v1131_v51 = vpop.f32.mrf.mxu3  ;;  %v1104_v52 = vadd.f32 %v1103_v36, %v1076_v33  ;;  %v1078_v54 = vpop.f32.mrf.mxu1  ;;  %v1051_v16 = vadd.f32 %v1050_v53, %v1023_v45 }
 0x122   : > { %v1295_v56 = vrot.slane %v1294_v35, 4  ;;  %v1250_v55 = vrot.slane %v1249_v34, 1 }
 0x123   : > { %v1132_v58 = vadd.f32 %v1131_v51, %v1104_v52  ;;  %v1079_v37 = vadd.f32 %v1078_v54, %v1051_v16 }
 0x124   : > { %v1296_v61 = vmax.f32 %v1294_v35, %v1295_v56  ;;  %v1251_v62 = vmax.f32 %v1249_v34, %v1250_v55 }
 0x125   : > { %v1143_v63 = vmax.f32 %v1132_v58, 0.0 }
 0x126   : > { %v1297_v44 = vrot.slane %v1296_v61, 2  ;;  %1285 = vmatmul.f32.vlgmr.msra.gmra.mxu2 %v1251_v62 }
 0x127   : > { %v1342_v0 = vsel %vm1341_vm8, %v1143_v63, -inf  ;;  %v1389_v47 = vsel %vm1388_vm9, %v1143_v63, -inf }
 0x128   : > { %v1298_v1 = vmax.f32 %v1296_v61, %v1297_v44  ;;  %v1343_v2 = vmax.f32 %v1340_v59, %v1342_v0  ;;  %v1106_v17 = vpop.f32.mrf.mxu2  ;;  %v1052_v46 = vpop.f32.mrf.mxu0 }
 0x129   : > { %v1134_v3 = vpop.f32.mrf.mxu3  ;;  %v1107_v39 = vadd.f32 %v1106_v17, %v1079_v37  ;;  %v1080_v41 = vpop.f32.mrf.mxu1 }
 0x12a   : > { %v1344_v4 = vrot.slane %v1343_v2, 4  ;;  %v1299_v57 = vrot.slane %v1298_v1, 1 }
 0x12b   : > { %v1135_v5 = vadd.f32 %v1134_v3, %v1107_v39 }
 0x12c   : > { %v1345_v8 = vmax.f32 %v1343_v2, %v1344_v4  ;;  %v1300_v11 = vmax.f32 %v1298_v1, %v1299_v57 }
 0x12d   : > { %v1144_v12 = vmax.f32 %v1135_v5, 0.0 }
 0x12e   : > { %v1346_v60 = vrot.slane %v1345_v8, 2  ;;  %1334 = vmatmul.f32.vlgmr.msra.gmra.mxu3 %v1300_v11 }
 0x12f   : > { %v1391_v49 = vsel %vm1390_vm10, %v1144_v12, -inf }
 0x130   : > { %v1347_v13 = vmax.f32 %v1345_v8, %v1346_v60  ;;  %v1392_v38 = vmax.f32 %v1389_v47, %v1391_v49  ;;  %v1108_v14 = vpop.f32.mrf.mxu2 }
 0x131   : > { %v1136_v15 = vpop.f32.mrf.mxu3 }
 0x132   : > { %v1393_v18 = vrot.slane %v1392_v38, 4  ;;  %v1348_v6 = vrot.slane %v1347_v13, 1 }
 0x134   : > { %v1394_v19 = vmax.f32 %v1392_v38, %v1393_v18  ;;  %v1349_v40 = vmax.f32 %v1347_v13, %v1348_v6 }
 0x136   : > { %v1395_v28 = vrot.slane %v1394_v19, 2  ;;  %1383 = vmatmul.f32.vlgmr.msrb.gmra.mxu0 %v1349_v40 }
 0x138   : > { %v1396_v9 = vmax.f32 %v1394_v19, %v1395_v28 }
 0x13a   : > { %v1397_v42 = vrot.slane %v1396_v9, 1 }
 0x13c   : > { %v1398_v20 = vmax.f32 %v1396_v9, %v1397_v42 }
 0x13e   : > { %1432 = vmatmul.f32.vlgmr.msrb.gmra.mxu1 %v1398_v20 }
 0x193   : > { %v1188_v22 = vpop.f32.mrf.mxu0 }
 0x194   : > { %v1191_v24 = vadd.f32 %v1188_v22, %v1145_v21 }
 0x19b   : > { %v1237_v23 = vpop.f32.mrf.mxu1 }
 0x19c   : > { %v1240_v26 = vadd.f32 %v1237_v23, %v1191_v24 }
 0x1a9   : > { %v1286_v25 = vpop.f32.mrf.mxu2 }
 0x1aa   : > { %v1289_v48 = vadd.f32 %v1286_v25, %v1240_v26 }
 0x1b1   : > { %v1335_v27 = vpop.f32.mrf.mxu3 }
 0x1b2   : > { %v1338_v50 = vadd.f32 %v1335_v27, %v1289_v48 }
 0x1b3   : > { %v1384_v29 = vpop.f32.mrf.mxu0 }
 0x1b4   : > { %v1387_v7 = vadd.f32 %v1384_v29, %v1338_v50 }
 0x1bb   : > { %v1433_v10 = vpop.f32.mrf.mxu1 }
 0x1bc   : > { %v1436_v30 = vadd.f32 %v1433_v10, %v1387_v7 }
 0x1be   : > { %v1962_v31 = vmul.f32 -1.442695, %v1436_v30 }
 0x1c0   : > { %2094 = vpow2.f32 %v1962_v31 }
 0x1c6   : > { %v2095_v43 = vpop.eup %2094 }
 0x1c7   : > { %v1440_v32 = vadd.f32 1.0, %v2095_v43 }
 0x1c9   : > { %2096 = vrcp.f32 %v1440_v32  ;;  %v1452_v36 = vand.u32 2147483648, %v1440_v32  ;;  %v1450_v45 = vand.u32 2147483647, %v1440_v32  ;;  %vm1446_vm12 = vweird.f32 %v1440_v32 }
 0x1cb   : > { %v1453_v53 = vor.u32 1.1754944e-38, %v1452_v36  ;;  %vm1451_vm14 = vcmp.eq.f32.partialorder %v1450_v45, 8.507059e+37 }
 0x1cf   : > { %v2097_v33 = vpop.eup %2096 }
 0x1d0   : > { %v1442_v34 = vmul.f32 %v2097_v33, %v1440_v32  ;;  %vm1447_vm11 = vweird.f32 %v2097_v33 }
 0x1d1   : > { %vm1448_vm13 = vmor %vm1446_vm12, %vm1447_vm11 }
 0x1d2   : > { %v1443_v35 = vsub.f32 1.0, %v1442_v34 }
 0x1d4   : > { %v1444_v51 = vmul.f32 %v2097_v33, %v1443_v35 }
 0x1d6   : > { %v1445_v52 = vadd.f32 %v2097_v33, %v1444_v51 }
 0x1d8   : > { %v1449_v54 = vsel %vm1448_vm13, %v2097_v33, %v1445_v52 }
 0x1d9   : > { %v1454_v56 = vsel %vm1451_vm14, %v1453_v53, %v1449_v54 }
 0x1da   : > { %1456 = vst [vmem:[%s216_s6] sm:$0x1] %v1454_v56 }
 0x1db   : > { %2125 = shalt.err (!%p2122_p3)
}
 0x1dc   : > { %2054 = dma.vmem_to_hbm [thread:$0]  (%p2230_p5), %s1469_s7, 16, %s1471_s8, %s1458_s10  }
 0x1dd PF: > { %p2060_p4 = scmp.ge.s32.totalorder %s2160_s21, 2  ;;  %s1482_s13 = sand.u32 1, %s2148_s18  }
 0x1de   : > { %s1483_s17 = scalar_lea.sflag [#allocation3], %s1482_s13 }
 0x1df   : > { %p2057_p7 = pnand %p2060_p4, %p2234_p6 }
 0x1e1   : > { %p2058_p8 = pneg %p2057_p7 }
 0x1e3   : > { %2143 = dma.done.wait (%p2058_p8), %s1483_s17, 16  }
 0x1e4   : > { %2145 = vsyncadd (%p2058_p8), %s1483_s17, 4294967280  ;;  %p15_p9 = scmp.ge.s32.totalorder %s2217_s24, 4   ;;  %s2913_s18 = smov %s2152_s19 }
 0x1e5   : > { %s2914_s19 = smov %s2156_s20  ;;  %s2915_s20 = smov %s2228_s27 }
 0x1e6   : > { %s2916_s21 = smov %s2217_s24  ;;  %17 = sbr.rel (!%p15_p9) target bundleno = 3 (0x3), region = 80 }
 0x1eb   :  { %1488 = vsyncpa [#allocation3], 1 }
 0x1ec   :  { %1490 = vsyncpa [#allocation3 + $0x1], 1 }

</bundles_post_ra>
